<compile_context>
chip_gen: v7x
topology: tpu7x:2x2x1
jax: 0.10.0
libtpu: 0.0.40
codegen_flags: <defaults>
</compile_context>

<pallas_src>
import functools

import jax
import jax.numpy as jnp
from jax import lax
from jax.experimental import pallas as pl
from jax.experimental.pallas import tpu as pltpu

INJ_EFFECT_WIDTH = 0.001
HID = 64          # hidden width of the MLP (fixed by the PyTorch module)
LANE = 128        # TPU lane width; all loop intermediates padded to this


# ---------------------------------------------------------------------------
# In-kernel helper (single-eval kernel only; fused kernel precomputes on host)
# ---------------------------------------------------------------------------
def _injection_effect(t, II, amt):
    """amt * exp(-fmod(t, II)^2 / (2*width^2)) on a (1,1) tile (exp -> EUP)."""
    tv = jnp.full((1, 1), t, dtype=jnp.float32)
    q = tv / II
    q_trunc = jnp.where(q >= 0, jnp.floor(q), -jnp.floor(-q))   # trunc toward 0
    rem = tv - q_trunc * II                                      # torch.fmod(t, II)
    w = jnp.float32(INJ_EFFECT_WIDTH)
    return amt * jnp.exp(-(rem * rem) / (2.0 * w * w))           # (1, 1)


# ---------------------------------------------------------------------------
# Single ODEF evaluation (the module's forward pass)
# ---------------------------------------------------------------------------
def odef_step_kernel(scal_ref, state_ref, static_ref,
                     w1s_ref, w1e_ref, w1t_ref, b1_ref,
                     w2_ref, b2_ref, out_ref, *, compute_dtype):
    """scal_ref : SMEM (4,) f32 -> [t, II, amt, inj_effect_scale]
       state_ref: VMEM (B, H)    static_ref: VMEM (B, S)
       w1s_ref  : VMEM (H, 128)  w1e_ref: VMEM (S, 128)  w1t_ref: VMEM (1, 128)
       b1_ref   : VMEM (1, 128)  (HID..127 zero-padded)
       w2_ref   : VMEM (128,128) b2_ref : VMEM (1, 128)  (zero-padded)
       out_ref  : VMEM (B, 128)  (lane-dense; wrapper slices [:, :H])
    """
    t = scal_ref[0]
    II = scal_ref[1]
    amt = scal_ref[2]
    scale = scal_ref[3]
    cd = compute_dtype

    inj = _injection_effect(t, II, amt)                          # (1, 1), f32

    pre = (
        jnp.dot(state_ref[...].astype(cd), w1s_ref[...].astype(cd),
                preferred_element_type=jnp.float32)
        + jnp.dot(static_ref[...].astype(cd), w1e_ref[...].astype(cd),
                  preferred_element_type=jnp.float32)
        + t * w1t_ref[...]                                       # t-column of W1
        + b1_ref[...]
    )                                                            # (B, 128)
    h = jnp.tanh(pre)                                            # padded lanes = 0
    out = (jnp.dot(h.astype(cd), w2_ref[...].astype(cd),
                   preferred_element_type=jnp.float32)
           + b2_ref[...])                                        # (B, 128)
    # (1,1) inj broadcasts over all 128 lanes; wrapper keeps only [:, :H].
    out_ref[...] = out + scale * inj


def odef_forward(t, state, static_embed, II, amt, params,
                 *, compute_dtype=jnp.float32):
    """One ODEF.forward evaluation. compute_dtype=jnp.bfloat16 on v6e/v7x."""
    B, H = state.shape
    S = static_embed.shape[1]

    scalars = jnp.stack([
        jnp.asarray(t, jnp.float32),
        jnp.asarray(II, jnp.float32),
        jnp.asarray(amt, jnp.float32),
        jnp.asarray(params["inj_effect_scale"], jnp.float32),
    ])                                                           # (4,) 1-D SMEM

    vmem = pl.BlockSpec(memory_space=pltpu.MemorySpace.VMEM)
    smem = pl.BlockSpec(memory_space=pltpu.MemorySpace.SMEM)

    n_bytes = 4 * (4 + state.size + static_embed.size
                   + params["w1s_pad"].size + params["w1e_pad"].size
                   + params["w1t_pad"].size + params["b1_pad"].size
                   + params["w2_pad"].size + params["b2_pad"].size
                   + B * LANE)
    cost = pl.CostEstimate(flops=2 * B * ((H + S + 1) * LANE + LANE * LANE),
                           transcendentals=B * LANE + 1,
                           bytes_accessed=n_bytes)

    out_pad = pl.pallas_call(
        functools.partial(odef_step_kernel, compute_dtype=compute_dtype),
        out_shape=jax.ShapeDtypeStruct((B, LANE), jnp.float32),
        in_specs=[smem] + [vmem] * 8,
        out_specs=vmem,
        cost_estimate=cost,
    )(scalars, state, static_embed,
      params["w1s_pad"], params["w1e_pad"], params["w1t_pad"], params["b1_pad"],
      params["w2_pad"], params["b2_pad"])
    return out_pad[:, :H]


# ---------------------------------------------------------------------------
# Fused multi-step forward-Euler solve: many ODEF evaluations in ONE
# pallas_call — weights resident in VMEM, state carried in vregs.
# ---------------------------------------------------------------------------
def odef_fused_euler_kernel(dt_ref, t_ref, inj_ref, state_ref, static_ref,
                            w1s_ref, w1e_ref, w1t_ref, b1_ref,
                            w2_ref, b2_ref, out_ref,
                            *, num_steps, compute_dtype):
    """dt_ref: SMEM (1,); t_ref/inj_ref: SMEM (num_steps,) precomputed schedule.
       state_ref/out_ref: VMEM (B, 128) lane-dense (cols H..127 ignored).
       w1s_ref: VMEM (128,128) (rows H.., cols HID.. zero); w2_ref: (128,128).
    """
    cd = compute_dtype
    dt = dt_ref[0]

    # Hoisted loop-invariant loads / casts (JAX does not CSE these in the body).
    w1s = w1s_ref[...].astype(cd)                                # (128, 128)
    w2 = w2_ref[...].astype(cd)                                  # (128, 128)
    w1t = w1t_ref[...]                                           # (1, 128)
    b2 = b2_ref[...]                                             # (1, 128)

    # static_embed is constant across steps: fold its Linear1 contribution and
    # the bias into a per-trajectory bias computed once (hoisted matmul).
    static_bias = (
        jnp.dot(static_ref[...].astype(cd), w1e_ref[...].astype(cd),
                preferred_element_type=jnp.float32)
        + b1_ref[...]
    )                                                            # (B, 128)

    def body(i, state):                                          # state in vregs
        t_i = t_ref[i]                                           # SMEM lookup
        inj_i = inj_ref[i]                                       # scale*amt*exp(..)
        pre = (jnp.dot(state.astype(cd), w1s,
                       preferred_element_type=jnp.float32)
               + static_bias + t_i * w1t)
        h = jnp.tanh(pre)
        deriv = (jnp.dot(h.astype(cd), w2,
                         preferred_element_type=jnp.float32)
                 + b2 + inj_i)
        return state + dt * deriv

    out_ref[...] = lax.fori_loop(0, num_steps, body, state_ref[...],
                                 unroll=True)                    # single store


def odef_fused_euler(t0, dt, num_steps, state, static_embed, II, amt, params,
                     *, compute_dtype=jnp.float32):
    B, H = state.shape
    S = static_embed.shape[1]

    t0 = jnp.asarray(t0, jnp.float32)
    dt = jnp.asarray(dt, jnp.float32)
    II = jnp.asarray(II, jnp.float32)
    amt = jnp.asarray(amt, jnp.float32)
    scale = jnp.asarray(params["inj_effect_scale"], jnp.float32)

    # Precomputed per-step schedule (no drift, no in-loop fmod/exp).
    t_vals = t0 + dt * jnp.arange(num_steps, dtype=jnp.float32)          # (T,)
    rem = t_vals - jnp.trunc(t_vals / II) * II
    inj_vals = scale * amt * jnp.exp(-(rem ** 2)
                                     / (2.0 * INJ_EFFECT_WIDTH ** 2))    # (T,)

    # Lane-dense state block (one-time layout plumbing in the wrapper).
    state_pad = jnp.zeros((B, LANE), jnp.float32).at[:, :H].set(state)

    vmem = pl.BlockSpec(memory_space=pltpu.MemorySpace.VMEM)
    smem = pl.BlockSpec(memory_space=pltpu.MemorySpace.SMEM)

    n_bytes = 4 * (1 + 2 * num_steps + B * LANE + static_embed.size
                   + params["w1s_padK"].size + params["w1e_pad"].size
                   + params["w1t_pad"].size + params["b1_pad"].size
                   + params["w2_pad"].size + params["b2_pad"].size
                   + B * LANE)
    cost = pl.CostEstimate(
        flops=2 * B * (S * LANE + num_steps * (LANE * LANE + LANE * LANE)),
        transcendentals=num_steps * B * LANE,
        bytes_accessed=n_bytes)

    out_pad = pl.pallas_call(
        functools.partial(odef_fused_euler_kernel,
                          num_steps=num_steps, compute_dtype=compute_dtype),
        out_shape=jax.ShapeDtypeStruct((B, LANE), jnp.float32),
        in_specs=[smem, smem, smem] + [vmem] * 8,
        out_specs=vmem,
        cost_estimate=cost,
    )(jnp.reshape(dt, (1,)), t_vals, inj_vals, state_pad, static_embed,
      params["w1s_padK"], params["w1e_pad"], params["w1t_pad"], params["b1_pad"],
      params["w2_pad"], params["b2_pad"])
    return out_pad[:, :H]


# ---------------------------------------------------------------------------
# Pure-JAX references (mirror the PyTorch forward)
# ---------------------------------------------------------------------------
def odef_reference(t, state, static_embed, II, amt, params):
    B = state.shape[0]
    t = jnp.asarray(t, jnp.float32)
    w1_full = jnp.concatenate(
        [params["w1_state"], params["w1_static"], params["w1_t_row"]], axis=0)
    t_feature = jnp.full((B, 1), t, dtype=jnp.float32)
    rem = t - jnp.trunc(t / II) * II
    inj = amt * jnp.exp(-(rem ** 2) / (2.0 * INJ_EFFECT_WIDTH ** 2))
    inp = jnp.concatenate([state, static_embed, t_feature], axis=-1)
    h = jnp.tanh(inp @ w1_full + params["b1"])
    out = h @ params["w2"] + params["b2"]
    return out + params["inj_effect_scale"] * inj


def euler_reference(t0, dt, num_steps, state, static_embed, II, amt, params):
    y = state
    t0 = jnp.asarray(t0, jnp.float32)
    dt = jnp.asarray(dt, jnp.float32)
    for i in range(num_steps):
        t_i = t0 + i * dt
        y = y + dt * odef_reference(t_i, y, static_embed, II, amt, params)
    return y


# ---------------------------------------------------------------------------
# Params
# ---------------------------------------------------------------------------
def init_params(key, hidden_dim, static_dim):
    d_in = hidden_dim + static_dim + 1
    k1, k2, k3, k4 = jax.random.split(key, 4)
    w1_t = jax.random.normal(k1, (d_in, HID), jnp.float32) * 0.1   # Linear1.weight.T
    b1 = jax.random.normal(k2, (1, HID), jnp.float32) * 0.1
    w2_t = jax.random.normal(k3, (HID, hidden_dim), jnp.float32) * 0.1
    b2 = jax.random.normal(k4, (1, hidden_dim), jnp.float32) * 0.1

    w1_state = w1_t[:hidden_dim]
    w1_static = w1_t[hidden_dim:hidden_dim + static_dim]
    w1_t_row = w1_t[hidden_dim + static_dim:]

    # Lane-dense zero-padded copies (hidden HID->LANE, output H->LANE).
    w1s_pad = jnp.zeros((hidden_dim, LANE), jnp.float32).at[:, :HID].set(w1_state)
    w1e_pad = jnp.zeros((static_dim, LANE), jnp.float32).at[:, :HID].set(w1_static)
    w1t_pad = jnp.zeros((1, LANE), jnp.float32).at[:, :HID].set(w1_t_row)
    b1_pad = jnp.zeros((1, LANE), jnp.float32).at[:, :HID].set(b1)
    # Fused-kernel state-weight block: K padded to LANE (rows H.. are zero).
    w1s_padK = jnp.zeros((LANE, LANE), jnp.float32).at[:hidden_dim, :HID].set(w1_state)
    w2_pad = jnp.zeros((LANE, LANE), jnp.float32).at[:HID, :hidden_dim].set(w2_t)
    b2_pad = jnp.zeros((1, LANE), jnp.float32).at[:, :hidden_dim].set(b2)

    return {
        "w1_state": w1_state, "w1_static": w1_static, "w1_t_row": w1_t_row,
        "b1": b1, "w2": w2_t, "b2": b2,
        "w1s_pad": w1s_pad, "w1e_pad": w1e_pad, "w1t_pad": w1t_pad,
        "b1_pad": b1_pad, "w1s_padK": w1s_padK,
        "w2_pad": w2_pad, "b2_pad": b2_pad,
        "inj_effect_scale": jnp.asarray(1.0, jnp.float32),
    }


if __name__ == "__main__":
    hidden_dim, static_dim, batch = 32, 15, 8

    key = jax.random.PRNGKey(0)
    kp, ks, ke = jax.random.split(key, 3)
    params = init_params(kp, hidden_dim, static_dim)
    state = jax.random.normal(ks, (batch, hidden_dim), jnp.float32)
    static_embed = jax.random.normal(ke, (batch, static_dim), jnp.float32)
    II = jnp.float32(24.0)     # inter-dose interval
    amt = jnp.float32(100.0)   # dose amount

    # 1) single ODEF evaluation, f32 matmuls, away from a dose (inj -> 0)
    t = jnp.float32(2.5)
    out = jax.block_until_ready(odef_forward(t, state, static_embed, II, amt, params))
    ref = odef_reference(t, state, static_embed, II, amt, params)
    assert out.shape == (batch, hidden_dim)
    assert jnp.allclose(out, ref, atol=1e-3, rtol=1e-3), "f32 step mismatch"

    # 2) near a dose time (injection branch active)
    t_dose = jnp.float32(24.0004)
    out_d = jax.block_until_ready(
        odef_forward(t_dose, state, static_embed, II, amt, params))
    ref_d = odef_reference(t_dose, state, static_embed, II, amt, params)
    assert jnp.allclose(out_d, ref_d, atol=1e-2, rtol=1e-2), "injection mismatch"

    # 3) bf16 matmul operands (MXU-native on v6e/v7x; accumulation stays f32)
    out_bf = jax.block_until_ready(
        odef_forward(t, state, static_embed, II, amt, params,
                     compute_dtype=jnp.bfloat16))
    assert jnp.allclose(out_bf, ref, atol=5e-2, rtol=5e-2), "bf16 step mismatch"

    # 4) fused multi-step Euler solve in a single pallas_call (f32)
    t0, dt, nsteps = jnp.float32(1.0), jnp.float32(0.05), 8
    y = jax.block_until_ready(
        odef_fused_euler(t0, dt, nsteps, state, static_embed, II, amt, params))
    y_ref = euler_reference(t0, dt, nsteps, state, static_embed, II, amt, params)
    assert y.shape == (batch, hidden_dim)
    assert jnp.allclose(y, y_ref, atol=1e-3, rtol=1e-3), "fused Euler mismatch"

    # 5) fused Euler with bf16 matmul operands (error compounds over steps)
    y_bf = jax.block_until_ready(
        odef_fused_euler(t0, dt, nsteps, state, static_embed, II, amt, params,
                         compute_dtype=jnp.bfloat16))
    assert jnp.allclose(y_bf, y_ref, atol=5e-2, rtol=5e-2), "bf16 fused mismatch"

    print("KERNEL_OK")
</pallas_src>

<mosaic_0001>
module attributes {stable_mosaic.version = 11 : i64} {
  func.func @odef_step_kernel(%arg0: memref<4xf32, #tpu.memory_space<smem>>, %arg1: memref<8x32xf32, #tpu.memory_space<vmem>>, %arg2: memref<8x15xf32, #tpu.memory_space<vmem>>, %arg3: memref<32x128xf32, #tpu.memory_space<vmem>>, %arg4: memref<15x128xf32, #tpu.memory_space<vmem>>, %arg5: memref<1x128xf32, #tpu.memory_space<vmem>>, %arg6: memref<1x128xf32, #tpu.memory_space<vmem>>, %arg7: memref<128x128xf32, #tpu.memory_space<vmem>>, %arg8: memref<1x128xf32, #tpu.memory_space<vmem>>, %arg9: memref<8x128xf32, #tpu.memory_space<vmem>>) attributes {dimension_semantics = [], scalar_prefetch = 0 : i64, scratch_operands = 0 : i64, tpu.core_type = #tpu.core_type<tc>} {
    %c0 = arith.constant 0 : index
    %0 = memref.load %arg0[%c0] : memref<4xf32, #tpu.memory_space<smem>>
    %c1 = arith.constant 1 : index
    %1 = memref.load %arg0[%c1] : memref<4xf32, #tpu.memory_space<smem>>
    %c2 = arith.constant 2 : index
    %2 = memref.load %arg0[%c2] : memref<4xf32, #tpu.memory_space<smem>>
    %c3 = arith.constant 3 : index
    %3 = memref.load %arg0[%c3] : memref<4xf32, #tpu.memory_space<smem>>
    %4 = vector.broadcast %0 : f32 to vector<1x1xf32>
    %5 = vector.broadcast %1 : f32 to vector<1x1xf32>
    %6 = arith.divf %4, %5 : vector<1x1xf32>
    %cst = arith.constant 0.000000e+00 : f32
    %7 = vector.broadcast %cst : f32 to vector<1x1xf32>
    %8 = arith.cmpf oge, %6, %7 : vector<1x1xf32>
    %9 = math.floor %6 : vector<1x1xf32>
    %cst_0 = arith.constant 0.000000e+00 : f32
    %10 = vector.broadcast %cst_0 : f32 to vector<1x1xf32>
    %11 = arith.subf %10, %6 : vector<1x1xf32>
    %12 = math.floor %11 : vector<1x1xf32>
    %cst_1 = arith.constant 0.000000e+00 : f32
    %13 = vector.broadcast %cst_1 : f32 to vector<1x1xf32>
    %14 = arith.subf %13, %12 : vector<1x1xf32>
    %15 = arith.select %8, %9, %14 : vector<1x1xi1>, vector<1x1xf32>
    %16 = vector.broadcast %1 : f32 to vector<1x1xf32>
    %17 = arith.mulf %15, %16 : vector<1x1xf32>
    %18 = arith.subf %4, %17 : vector<1x1xf32>
    %19 = arith.mulf %18, %18 : vector<1x1xf32>
    %cst_2 = arith.constant 0.000000e+00 : f32
    %20 = vector.broadcast %cst_2 : f32 to vector<1x1xf32>
    %21 = arith.subf %20, %19 : vector<1x1xf32>
    %cst_3 = arith.constant 2.000000e+00 : f32
    %cst_4 = arith.constant 1.000000e-03 : f32
    %22 = arith.mulf %cst_3, %cst_4 : f32
    %cst_5 = arith.constant 1.000000e-03 : f32
    %23 = arith.mulf %22, %cst_5 : f32
    %24 = vector.broadcast %23 : f32 to vector<1x1xf32>
    %25 = arith.divf %21, %24 : vector<1x1xf32>
    %26 = math.exp %25 : vector<1x1xf32>
    %27 = vector.broadcast %2 : f32 to vector<1x1xf32>
    %28 = arith.mulf %27, %26 : vector<1x1xf32>
    %c0_6 = arith.constant 0 : index
    %c0_7 = arith.constant 0 : index
    %29 = vector.load %arg1[%c0_6, %c0_7] : memref<8x32xf32, #tpu.memory_space<vmem>>, vector<8x32xf32>
    %c0_8 = arith.constant 0 : index
    %c0_9 = arith.constant 0 : index
    %30 = vector.load %arg3[%c0_8, %c0_9] : memref<32x128xf32, #tpu.memory_space<vmem>>, vector<32x128xf32>
    %cst_10 = arith.constant dense<0.000000e+00> : vector<8x128xf32>
    %31 = tpu.matmul %29, %30, %cst_10 {dimension_numbers = #tpu.dot_dimension_numbers<[1], [0], [0], [1], [0, 0, 1, 1], [], []>} : vector<8x32xf32>, vector<32x128xf32>, vector<8x128xf32> -> vector<8x128xf32>
    %c0_11 = arith.constant 0 : index
    %c0_12 = arith.constant 0 : index
    %32 = vector.load %arg2[%c0_11, %c0_12] : memref<8x15xf32, #tpu.memory_space<vmem>>, vector<8x15xf32>
    %c0_13 = arith.constant 0 : index
    %c0_14 = arith.constant 0 : index
    %33 = vector.load %arg4[%c0_13, %c0_14] : memref<15x128xf32, #tpu.memory_space<vmem>>, vector<15x128xf32>
    %cst_15 = arith.constant dense<0.000000e+00> : vector<8x128xf32>
    %34 = tpu.matmul %32, %33, %cst_15 {dimension_numbers = #tpu.dot_dimension_numbers<[1], [0], [0], [1], [0, 0, 1, 1], [], []>} : vector<8x15xf32>, vector<15x128xf32>, vector<8x128xf32> -> vector<8x128xf32>
    %35 = arith.addf %31, %34 : vector<8x128xf32>
    %c0_16 = arith.constant 0 : index
    %c0_17 = arith.constant 0 : index
    %36 = vector.load %arg5[%c0_16, %c0_17] : memref<1x128xf32, #tpu.memory_space<vmem>>, vector<1x128xf32>
    %37 = vector.broadcast %0 : f32 to vector<1x128xf32>
    %38 = arith.mulf %37, %36 : vector<1x128xf32>
    %39 = vector.broadcast %38 : vector<1x128xf32> to vector<8x128xf32>
    %40 = arith.addf %35, %39 : vector<8x128xf32>
    %c0_18 = arith.constant 0 : index
    %c0_19 = arith.constant 0 : index
    %41 = vector.load %arg6[%c0_18, %c0_19] : memref<1x128xf32, #tpu.memory_space<vmem>>, vector<1x128xf32>
    %42 = vector.broadcast %41 : vector<1x128xf32> to vector<8x128xf32>
    %43 = arith.addf %40, %42 : vector<8x128xf32>
    %44 = math.tanh %43 : vector<8x128xf32>
    %c0_20 = arith.constant 0 : index
    %c0_21 = arith.constant 0 : index
    %45 = vector.load %arg7[%c0_20, %c0_21] : memref<128x128xf32, #tpu.memory_space<vmem>>, vector<128x128xf32>
    %cst_22 = arith.constant dense<0.000000e+00> : vector<8x128xf32>
    %46 = tpu.matmul %44, %45, %cst_22 {dimension_numbers = #tpu.dot_dimension_numbers<[1], [0], [0], [1], [0, 0, 1, 1], [], []>} : vector<8x128xf32>, vector<128x128xf32>, vector<8x128xf32> -> vector<8x128xf32>
    %c0_23 = arith.constant 0 : index
    %c0_24 = arith.constant 0 : index
    %47 = vector.load %arg8[%c0_23, %c0_24] : memref<1x128xf32, #tpu.memory_space<vmem>>, vector<1x128xf32>
    %48 = vector.broadcast %47 : vector<1x128xf32> to vector<8x128xf32>
    %49 = arith.addf %46, %48 : vector<8x128xf32>
    %50 = vector.broadcast %3 : f32 to vector<1x1xf32>
    %51 = arith.mulf %50, %28 : vector<1x1xf32>
    %52 = vector.broadcast %51 : vector<1x1xf32> to vector<8x128xf32>
    %53 = arith.addf %49, %52 : vector<8x128xf32>
    %c0_25 = arith.constant 0 : index
    %c0_26 = arith.constant 0 : index
    %54 = vector.load %arg9[%c0_25, %c0_26] : memref<8x128xf32, #tpu.memory_space<vmem>>, vector<8x128xf32>
    tpu.vector_store %arg9[%c0_25, %c0_26], %53 {strides = array<i32>} : memref<8x128xf32, #tpu.memory_space<vmem>>, vector<8x128xf32>,
    return
  }
}

</mosaic_0001>

<bundles_post_ra>
// kernel: tpu_custom_call.1
= control target key start
LH: loop header
LB: loop body
LE: loop exit
PB: predicated region body
PF: predicated region fallthrough
CT: control target
= control target key end

     0   :  { %14 = vsyncpa [#allocation5], 0  ;;  %s895_s0 = inlined_call_operand.hbm [shape: f32[4], index: 0, kind: input, shape index: {}]   ;;  %s896_s1 = inlined_call_operand.hbm [shape: f32[8,32], index: 1, kind: input, shape index: {}]   ;;  %s897_s2 = inlined_call_operand.hbm [shape: f32[8,15], index: 2, kind: input, shape index: {}]   ;;  %s898_s3 = inlined_call_operand.hbm [shape: f32[32,128], index: 3, kind: input, shape index: {}]   ;;  %s899_s4 = inlined_call_operand.hbm [shape: f32[15,128], index: 4, kind: input, shape index: {}]   ;;  %s900_s5 = inlined_call_operand.vmem [shape: f32[1,128], index: 5, kind: input, shape index: {}]   ;;  %s901_s6 = inlined_call_operand.vmem [shape: f32[1,128], index: 6, kind: input, shape index: {}]   ;;  %s902_s7 = inlined_call_operand.hbm [shape: f32[128,128], index: 7, kind: input, shape index: {}]   ;;  %s903_s8 = inlined_call_operand.vmem [shape: f32[1,128], index: 8, kind: input, shape index: {}]   ;;  %s904_s9 = inlined_call_operand.hbm [shape: f32[8,128], index: 9, kind: output, shape index: {}]  }
   0x1   :  { %15 = vsyncpa [#allocation3], 0 }
   0x2   :  { %16 = vsyncpa [#allocation8], 0 }
   0x3   :  { %17 = vsyncpa [#allocation11], 0 }
   0x4   :  { %18 = vsyncpa [#allocation4], 0  ;;  %s716_s30 = smov [#allocation7]   ;;  %s564_s13 = scalar_lea.hbm %s897_s2, 128 }
   0x5   :  { %s43_s10 = sshll.u32 %s716_s30, 4  ;;  %p565_p0 = scmp.ne.s32.totalorder %s897_s2, %s564_s13  ;;  %s44_s10 = int_to_ptr.vmem [resolvable:$true] %s43_s10 }
   0x6   :  { %p568_p1 = scmp.lt.u32.totalorder %s564_s13, %s897_s2 }
   0x8   :  { %p570_p2 = pnand %p568_p1, %p565_p0 }
   0xa   :  { %573 = shalt.err (!%p570_p2)
}
   0xb   :  { %s574_s18 = scalar_lea.vmem %s44_s10, 128  ;;  %p579_p4 = scmp.lt.s32.totalorder %s44_s10, %s44_s10 }
   0xc   :  { %p575_p3 = scmp.ne.s32.totalorder %s44_s10, %s574_s18  ;;  %p580_p5 = scmp.lt.s32.totalorder %s574_s18, %s574_s18 }
   0xe   :  { %p581_p6 = por %p580_p5, %p579_p4 }
  0x10   :  { %p582_p7 = pnand %p581_p6, %p575_p3 }
  0x12   :  { %585 = shalt.err (!%p582_p7)
}
  0x13   :  { %46 = dma.hbm_to_vmem [thread:$0]  %s897_s2, 128, %s44_s10, [#allocation8]  }
  0x14   :  { %s717_s21 = smov [#allocation10]   ;;  %s586_s25 = scalar_lea.hbm %s899_s4, 256 }
  0x15   :  { %s64_s22 = sshll.u32 %s717_s21, 4  ;;  %p587_p8 = scmp.ne.s32.totalorder %s899_s4, %s586_s25  ;;  %s65_s22 = int_to_ptr.vmem [resolvable:$true] %s64_s22 }
  0x16   :  { %p590_p9 = scmp.lt.u32.totalorder %s586_s25, %s899_s4 }
  0x18   :  { %p592_p10 = pnand %p590_p9, %p587_p8 }
  0x1a   :  { %595 = shalt.err (!%p592_p10)
}
  0x1b   :  { %s596_s30 = scalar_lea.vmem %s65_s22, 256  ;;  %p601_p12 = scmp.lt.s32.totalorder %s65_s22, %s65_s22 }
  0x1c   :  { %p597_p11 = scmp.ne.s32.totalorder %s65_s22, %s596_s30  ;;  %p602_p13 = scmp.lt.s32.totalorder %s596_s30, %s596_s30 }
  0x1e   :  { %p603_p0 = por %p602_p13, %p601_p12 }
  0x20   :  { %p604_p1 = pnand %p603_p0, %p597_p11 }
  0x22   :  { %607 = shalt.err (!%p604_p1)
}
  0x23   :  { %s718_s2 = smov 128   ;;  %s719_s10 = smov 8  }
  0x24   :  { %70 = dma.hbm_to_vmem [thread:$0]  %s899_s4, 256, %s65_s22, [#allocation11], %s718_s2, %s718_s2, %s719_s10  }
  0x25   :  { %s608_s15 = scalar_lea.hbm %s895_s0, 16 }
  0x26   :  { %p609_p2 = scmp.ne.s32.totalorder %s895_s0, %s608_s15  ;;  %p612_p3 = scmp.lt.u32.totalorder %s608_s15, %s895_s0 }
  0x28   :  { %p614_p4 = pnand %p612_p3, %p609_p2 }
  0x2a   :  { %617 = shalt.err (!%p614_p4)
}
  0x2b   :  { %s720_s20 = smov [#allocation2]   ;;  %s721_s4 = smov [#allocation6]  }
  0x2c   :  { %26 = dma.hbm_to_smem %s895_s0, 16, %s720_s20, [#allocation5]  }
  0x2d   :  { %s33_s22 = sshll.u32 %s721_s4, 4  ;;  %s722_s24 = smov [#allocation9]   ;;  %s34_s22 = int_to_ptr.vmem [resolvable:$true] %s33_s22 }
  0x2e   :  { %s52_s25 = sshll.u32 %s722_s24, 4  ;;  %s618_s28 = scalar_lea.hbm %s896_s1, 128  ;;  %s53_s25 = int_to_ptr.vmem [resolvable:$true] %s52_s25 }
  0x2f   :  { %p619_p5 = scmp.ne.s32.totalorder %s896_s1, %s618_s28  ;;  %p622_p6 = scmp.lt.u32.totalorder %s618_s28, %s896_s1 }
  0x31   :  { %p624_p7 = pnand %p622_p6, %p619_p5 }
  0x33   :  { %627 = shalt.err (!%p624_p7)
}
  0x34   :  { %s628_s0 = scalar_lea.vmem %s34_s22, 128  ;;  %p633_p9 = scmp.lt.s32.totalorder %s34_s22, %s34_s22 }
  0x35   :  { %p629_p8 = scmp.ne.s32.totalorder %s34_s22, %s628_s0  ;;  %p634_p10 = scmp.lt.s32.totalorder %s628_s0, %s628_s0 }
  0x37   :  { %p635_p11 = por %p634_p10, %p633_p9 }
  0x39   :  { %p636_p12 = pnand %p635_p11, %p629_p8 }
  0x3b   :  { %639 = shalt.err (!%p636_p12)
}
  0x3c   :  { %36 = dma.hbm_to_vmem [thread:$0]  %s896_s1, 128, %s34_s22, [#allocation3]  }
  0x3d   :  { %s640_s17 = scalar_lea.hbm %s898_s3, 512 }
  0x3e   :  { %p641_p13 = scmp.ne.s32.totalorder %s898_s3, %s640_s17  ;;  %p644_p0 = scmp.lt.u32.totalorder %s640_s17, %s898_s3 }
  0x40   :  { %p646_p1 = pnand %p644_p0, %p641_p13 }
  0x42   :  { %649 = shalt.err (!%p646_p1)
}
  0x43   :  { %s650_s23 = scalar_lea.vmem %s53_s25, 512  ;;  %p655_p3 = scmp.lt.s32.totalorder %s53_s25, %s53_s25 }
  0x44   :  { %p651_p2 = scmp.ne.s32.totalorder %s53_s25, %s650_s23  ;;  %p656_p4 = scmp.lt.s32.totalorder %s650_s23, %s650_s23 }
  0x46   :  { %p657_p5 = por %p656_p4, %p655_p3 }
  0x48   :  { %p658_p6 = pnand %p657_p5, %p651_p2 }
  0x4a   :  { %661 = shalt.err (!%p658_p6)
}
  0x4b   :  { %58 = dma.hbm_to_vmem [thread:$0]  %s898_s3, 512, %s53_s25, [#allocation8], %s718_s2, %s718_s2, %s719_s10  }
  0x4c   :  { %s723_s22 = smov [#allocation12]   ;;  %s662_s28 = scalar_lea.hbm %s902_s7, 2048 }
  0x4d   :  { %s80_s24 = sshll.u32 %s723_s22, 4  ;;  %p663_p7 = scmp.ne.s32.totalorder %s902_s7, %s662_s28  ;;  %s81_s24 = int_to_ptr.vmem [resolvable:$true] %s80_s24 }
  0x4e   :  { %p666_p8 = scmp.lt.u32.totalorder %s662_s28, %s902_s7 }
  0x50   :  { %p668_p9 = pnand %p666_p8, %p663_p7 }
  0x52   :  { %671 = shalt.err (!%p668_p9)
}
  0x53   :  { %s672_s0 = scalar_lea.vmem %s81_s24, 2048  ;;  %p677_p11 = scmp.lt.s32.totalorder %s81_s24, %s81_s24 }
  0x54   :  { %p673_p10 = scmp.ne.s32.totalorder %s81_s24, %s672_s0  ;;  %p678_p12 = scmp.lt.s32.totalorder %s672_s0, %s672_s0 }
  0x56   :  { %p679_p13 = por %p678_p12, %p677_p11 }
  0x58   :  { %p680_p0 = pnand %p679_p13, %p673_p10 }
  0x5a   :  { %683 = shalt.err (!%p680_p0)
}
  0x5b   :  { %86 = dma.hbm_to_vmem [thread:$0]  %s902_s7, 2048, %s81_s24, [#allocation11], %s718_s2, %s718_s2, %s719_s10  }
  0x5c   :  { %706 = dma.done.wait [#allocation5], 16  }
  0x5d   :  { %707 = vsyncadd [#allocation5], 4294967280 }
  0x5e   :  { %708 = dma.done.wait [#allocation3], 128  }
  0x5f   :  { %709 = vsyncadd [#allocation3], 4294967168 }
  0x60   :  { %710 = dma.done.wait [#allocation8], 640  }
  0x61   :  { %711 = vsyncadd [#allocation8], 4294966656 }
  0x62   :  { %712 = dma.done.wait [#allocation11], 2304  }
  0x63   :  { %713 = vsyncadd [#allocation11], 4294964992 }
  0x64   :  { %107 = sfence }
  0x65   :  { %v138_v0 = vld [vmem:[#allocation10] sm:$0xff]  ;;  %v139_v1 = vld [vmem:[#allocation10 + $0x8] sm:$0x7f]  ;;  %vm144_vm0 = vcmask 1046528   ;;  %v724_v2 = vmov 0.0|0.0   ;;  %vm725_vm1 = vmmov 1   ;;  %v295_v37 = vlaneseq }
  0x66   :  { %511 = vmatprep.subr.bf16.mxu1 %v724_v2  ;;  %v512_v3 = vpack.c.bf16 %v139_v1, %v138_v0  ;;  %vm513_vm2 = vmpackc.low %vm144_vm0, %vm725_vm1  ;;  %v133_v4 = vld [vmem:[#allocation9] sm:$0xff]  ;;  %521 = vmatprep.subr.bf16.mxu0 %v724_v2  ;;  %vm726_vm3 = vmmov 0   ;;  %v727_v5 = vmov 0.0   ;;  %v137_v6 = vld [vmem:[#allocation7] sm:$0xff]  ;;  %vm140_vm4 = vcmask 121856   ;;  %s108_s7 = sld [smem:[#allocation2]] }
  0x67   :  { %462 = vmatprep.mubr.msk.f32.mxu1 %vm726_vm3, %v727_v5  ;;  %v134_v7 = vld [vmem:[#allocation9 + $0x8] sm:$0xff]  ;;  %508 = vmatprep.mubr.msk.f32.mxu0 %vm726_vm3, %v727_v5  ;;  %v135_v9 = vld [vmem:[#allocation9 + $0x10] sm:$0xff]  ;;  %v311_v11 = vld [vmem:[#allocation12 + $0x8] sm:$0xff]  ;;  %vm218_vm5 = vcmask 261120   ;;  %v296_v38 = vshrl.u32 %v295_v37, 7  ;;  %s425_s15 = sld [smem:[#allocation2 + $0x1]] }
  0x68   :  { %514 = vmatpush3.bf16.msk.msra.mxu1 %vm513_vm2, %v512_v3  ;;  %v516_v8 = vpack.c.bf16 %v134_v7, %v133_v4  ;;  %v310_v10 = vld [vmem:[#allocation12] sm:$0xff]  ;;  %v136_v12 = vld [vmem:[#allocation9 + $0x18] sm:$0xff]  ;;  %v312_v14 = vld [vmem:[#allocation12 + $0x10] sm:$0xff]  ;;  %s728_s18 = smov [#allocation13]  }
  0x69   :  { %515 = vmatprep.subr.bf16.mxu1 %v724_v2  ;;  %v522_v13 = vpack.c.bf16 %v311_v11, %v310_v10  ;;  %v313_v15 = vld [vmem:[#allocation12 + $0x18] sm:$0xff]  ;;  %v519_v17 = vpack.c.bf16 %v136_v12, %v135_v9  ;;  %v132_v18 = vld [vmem:[#allocation6] sm:$0xff]  ;;  %v315_v20 = vld [vmem:[#allocation12 + $0x28] sm:$0xff]  ;;  %v297_v44 = vsub.s32 0, %v296_v38  ;;  %s413_s19 = sshll.u32 %s728_s18, 4  ;;  %s414_s19 = int_to_ptr.vmem [resolvable:$true] %s413_s19 }
  0x6a   :  { %v525_v16 = vpack.c.bf16 %v313_v15, %v312_v14  ;;  %v314_v19 = vld [vmem:[#allocation12 + $0x20] sm:$0xff]  ;;  %v316_v22 = vld [vmem:[#allocation12 + $0x30] sm:$0xff]  ;;  %v317_v23 = vld [vmem:[#allocation12 + $0x38] sm:$0xff]  ;;  %s684_s20 = scalar_lea.vmem %s414_s19, 128  ;;  %p689_p2 = scmp.lt.s32.totalorder %s414_s19, %s414_s19 }
  0x6b   :  { %463 = vmatmul.mubr.msk.f32.vlgmr.msra.gmra.mrb[0].mxu1 %vm140_vm4, %v137_v6  ;;  %523 = vmatpush3.bf16.msra.mxu0 %v522_v13  ;;  %v528_v21 = vpack.c.bf16 %v315_v20, %v314_v19  ;;  %v531_v24 = vpack.c.bf16 %v317_v23, %v316_v22  ;;  %v318_v25 = vld [vmem:[#allocation12 + $0x40] sm:$0xff]  ;;  %v319_v26 = vld [vmem:[#allocation12 + $0x48] sm:$0xff]  ;;  %v320_v28 = vld [vmem:[#allocation12 + $0x50] sm:$0xff]  ;;  %p685_p1 = scmp.ne.s32.totalorder %s414_s19, %s684_s20  ;;  %p690_p3 = scmp.lt.s32.totalorder %s684_s20, %s684_s20 }
  0x6c   :  { %517 = vmatpush3.bf16.msra.mxu1 %v516_v8  ;;  %473 = vmatprep.mubr.msk.f32.mxu1 %vm726_vm3, %v727_v5  ;;  %v534_v27 = vpack.c.bf16 %v319_v26, %v318_v25  ;;  %v321_v29 = vld [vmem:[#allocation12 + $0x58] sm:$0xff]  ;;  %v322_v31 = vld [vmem:[#allocation12 + $0x60] sm:$0xff]  ;;  %v323_v32 = vld [vmem:[#allocation12 + $0x68] sm:$0xff]  ;;  %v112_v40 = vstv %s108_s7 }
  0x6d   :  { %518 = vmatprep.subr.bf16.mxu1 %v724_v2  ;;  %524 = vmatprep.subr.bf16.mxu0 %v724_v2  ;;  %v537_v30 = vpack.c.bf16 %v321_v29, %v320_v28  ;;  %v540_v33 = vpack.c.bf16 %v323_v32, %v322_v31  ;;  %v324_v34 = vld [vmem:[#allocation12 + $0x70] sm:$0xff]  ;;  %v325_v35 = vld [vmem:[#allocation12 + $0x78] sm:$0xff]  ;;  %v292_v41 = vld [vmem:[%s900_s5] sm:$0x1]  ;;  %v113_v53 = vstv %s425_s15  ;;  %s426_s5 = sld [smem:[#allocation2 + $0x2]]  ;;  %p691_p4 = por %p690_p3, %p689_p2 }
  0x6e   :  { %v543_v36 = vpack.c.bf16 %v325_v35, %v324_v34  ;;  %v293_v43 = vmul.f32 %v292_v41, %v112_v40  ;;  %v431_v49 = vld [vmem:[%s901_s6] ss:$0 sm:$0xff]  ;;  %s427_s6 = sld [smem:[#allocation2 + $0x3]] }
  0x6f   :  { %526 = vmatpush3.bf16.msra.mxu0 %v525_v16  ;;  %v432_v7 = vld [vmem:[%s903_s8] ss:$0 sm:$0xff]  ;;  %p692_p5 = pnand %p691_p4, %p685_p1 }
  0x70   :  { %520 = vmatpush3.bf16.msra.mxu1 %v519_v17  ;;  %527 = vmatprep.subr.bf16.mxu0 %v724_v2  ;;  %v298_v45 = vrot.slane %v293_v43, %v297_v44 }
  0x73   :  { %474 = vmatmul.mubr.msk.f32.vlgmr.msra.gmra.mrb[2].mxu1 %vm218_vm5, %v132_v18  ;;  %529 = vmatpush3.bf16.msra.mxu0 %v528_v21  ;;  %v130_v4 = vstv %s426_s5 }
  0x74   :  { %530 = vmatprep.subr.bf16.mxu0 %v724_v2  ;;  %v403_v6 = vstv %s427_s6 }
  0x77   :  { %532 = vmatpush3.bf16.msra.mxu0 %v531_v24 }
  0x78   :  { %533 = vmatprep.subr.bf16.mxu0 %v724_v2 }
  0x7b   :  { %535 = vmatpush3.bf16.msra.mxu0 %v534_v27 }
  0x7c   :  { %536 = vmatprep.subr.bf16.mxu0 %v724_v2 }
  0x7f   :  { %538 = vmatpush3.bf16.msra.mxu0 %v537_v30 }
  0x80   :  { %539 = vmatprep.subr.bf16.mxu0 %v724_v2 }
  0x83   :  { %541 = vmatpush3.bf16.msra.mxu0 %v540_v33 }
  0x84   :  { %542 = vmatprep.subr.bf16.mxu0 %v724_v2 }
  0x87   :  { %544 = vmatpush3.bf16.msra.mxu0 %v543_v36 }
 0x13e   :  { %v214_v39 = vpop.f32.mrb[0].mxu1 }
 0x13f   :  { %v464_v42 = vpop.f32.mrb[1].mxu1 }
 0x146   :  { %v288_v46 = vpop.f32.mrb[2].mxu1 }
 0x147   :  { %v289_v47 = vadd.f32 %v288_v46, %v214_v39  ;;  %v475_v48 = vpop.f32.mrb[3].mxu1 }
 0x149   :  { %v300_v50 = vadd.f32 %v298_v45, %v289_v47 }
 0x14b   :  { %v308_v51 = vadd.f32 %v431_v49, %v300_v50 }
 0x14d   :  { %558 = vtanh.f32 %v308_v51 }
 0x14e   :  { %560 = vrcp.f32 %v113_v53 }
 0x157   :  { %v559_v52 = vpop.eup %558 }
 0x158   :  { %509 = vmatmul.mubr.f32.vlgmr.msra.gmra.mrb[0].mxu0 %v559_v52  ;;  %v561_v54 = vpop.eup %560 }
 0x159   :  { %v115_v55 = vmul.f32 %v561_v54, %v112_v40 }
 0x15b   :  { %v118_v56 = vsub.f32 0.0, %v115_v55  ;;  %v117_v58 = vfloor.f32 %v115_v55  ;;  %vm116_vm6 = vcmp.ge.f32.partialorder %v115_v55, 0.0 }
 0x15d   :  { %v119_v57 = vfloor.f32 %v118_v56 }
 0x15f   :  { %v120_v59 = vsub.f32 0.0, %v119_v57 }
 0x161   :  { %v121_v60 = vsel %vm116_vm6, %v117_v58, %v120_v59 }
 0x162   :  { %v122_v61 = vmul.f32 %v121_v60, %v113_v53 }
 0x164   :  { %v123_v62 = vsub.f32 %v112_v40, %v122_v61 }
 0x166   :  { %v124_v63 = vmul.f32 %v123_v62, %v123_v62 }
 0x168   :  { %v125_v0 = vsub.f32 0.0, %v124_v63 }
 0x16a   :  { %v127_v1 = vmul.f32 499999.94, %v125_v0 }
 0x16c   :  { %v128_v2 = vmul.f32 1.442695, %v127_v1 }
 0x16e   :  { %562 = vpow2.f32 %v128_v2 }
 0x178   :  { %v563_v3 = vpop.eup %562 }
 0x179   :  { %v131_v5 = vmul.f32 %v563_v3, %v130_v4 }
 0x17b   :  { %v404_v8 = vmul.f32 %v403_v6, %v131_v5 }
 0x22b   :  { %v399_v9 = vpop.f32.mrb[0].mxu0 }
 0x22c   :  { %v400_v10 = vadd.f32 %v432_v7, %v399_v9  ;;  %v510_v11 = vpop.f32.mrb[1].mxu0 }
 0x22e   :  { %v405_v12 = vadd.f32 %v404_v8, %v400_v10 }
 0x230   :  { %406 = vst [vmem:[#allocation13] sm:$0xff] %v405_v12 }
 0x231   :  { %695 = shalt.err (!%p692_p5)
}
 0x232   :  { %s696_s8 = scalar_lea.hbm %s904_s9, 128 }
 0x233   :  { %p697_p6 = scmp.ne.s32.totalorder %s904_s9, %s696_s8  ;;  %p700_p7 = scmp.lt.u32.totalorder %s696_s8, %s904_s9 }
 0x235   :  { %p702_p8 = pnand %p700_p7, %p697_p6 }
 0x237   :  { %705 = shalt.err (!%p702_p8)
}
 0x238   :  { %416 = dma.vmem_to_hbm [thread:$0]  %s414_s19, 128, %s904_s9, [#allocation4]  }
 0x239   :  { %714 = dma.done.wait [#allocation4], 128  }
 0x23a   :  { %715 = vsyncadd [#allocation4], 4294967168 }
 0x23b   :  { %420 = vsyncpa [#allocation3], 1 }
 0x23c   :  { %421 = vsyncpa [#allocation8], 1 }
 0x23d   :  { %422 = vsyncpa [#allocation11], 1 }
 0x23e   :  { %423 = vsyncpa [#allocation4], 1 }
 0x23f   :  { %424 = vsyncpa [#allocation5], 1 }

</bundles_post_ra>
